<compile_context>
chip_gen: v7x
topology: tpu7x:2x2x1
jax: 0.10.0
libtpu: 0.0.40
codegen_flags: <defaults>
</compile_context>

<pallas_src>
import jax
import jax.numpy as jnp
from jax import lax
from jax.experimental import pallas as pl
from jax.experimental.pallas import tpu as pltpu


def _decoder_block_kernel(x_ref, bw1_ref, bw2_ref, b1_ref, b2_ref, o_ref):
    """Fused decoder block, lane-packed (row, W*C) layout.

    x_ref  : (b_tile, R, K_in)     bf16. Per element: rows 0..1 zero (top pad),
                                   rows 2..H+1 data, rows H+2..R-1 zero.
                                   Lanes = [pre-upsample xu (W/2*C_up) | skip (W*C_skip)].
    bw1_ref: (K_in, 3*W*C_out)     bf16 banded conv1 weights, dh stacked on N.
    bw2_ref: (W*C_out, 3*W*C_out)  bf16 banded conv2 weights, dh stacked on N.
    b1_ref, b2_ref: (1, W*C_out)   f32 lane-packed biases.
    o_ref  : (b_tile, H, W*C_out)  lane-dense output.
    """
    b_tile, rows, _ = x_ref.shape
    h = o_ref.shape[1]
    wc = o_ref.shape[2]

    bw1 = bw1_ref[...]
    bw2 = bw2_ref[...]
    b1 = b1_ref[...]
    b2 = b2_ref[...]

    # y1 row r holds conv1 output row r-1; rows 0 and h+1.. double as conv2's
    # 'same' zero padding along H.
    r_idx = lax.broadcasted_iota(jnp.int32, (rows - 2, 1), 0)
    y1_mask = jnp.logical_and(r_idx >= 1, r_idx <= h)

    for b in range(b_tile):  # static unroll; b_tile is small
        x = x_ref[b]                                                 # (R, K_in)

        # conv1: one MXU dot; W taps, W 'same' padding and the W-direction 2x
        # nearest upsample are all folded into the banded weights.
        p = jnp.dot(x, bw1, preferred_element_type=jnp.float32)     # (R, 3*wc)
        # H-direction taps: shifted row views of the lane-aligned dh column groups.
        y1 = (p[0:rows - 2, 0:wc]
              + p[1:rows - 1, wc:2 * wc]
              + p[2:rows, 2 * wc:3 * wc])                            # (R-2, wc)
        y1 = jnp.maximum(y1 + b1, 0.0)
        y1 = jnp.where(y1_mask, y1, 0.0)                             # zero border rows

        # conv2 directly on the VMEM-resident intermediate (no HBM round trip).
        q = jnp.dot(y1.astype(bw2.dtype), bw2,
                    preferred_element_type=jnp.float32)              # (R-2, 3*wc)
        y2 = (q[0:h, 0:wc]
              + q[1:h + 1, wc:2 * wc]
              + q[2:h + 2, 2 * wc:3 * wc])                           # (H, wc)
        y2 = jnp.maximum(y2 + b2, 0.0)

        o_ref[b] = y2.astype(o_ref.dtype)                            # lane-dense store


def _band_weights(w_hwio, in_width, out_width, upsample_w):
    """Fold the 3-wide 'same' conv along W (and optionally the W-direction 2x
    nearest-neighbour upsample) into banded (in_W*Cin, out_W*Cout) matrices,
    one per kernel row dh. Out-of-range taps (the W zero padding) are omitted,
    so no data padding along W is needed."""
    kh, kw, cin, cout = w_hwio.shape
    wi = jnp.arange(in_width)[None, :, None]       # input pixel (pre-upsample if folded)
    wo = jnp.arange(out_width)[None, None, :]      # output pixel
    dw = jnp.arange(kw)[:, None, None]
    u = wo + dw - (kw // 2)                        # conv-input column read
    src = u // 2 if upsample_w else u              # column it originates from
    sel = ((wi == src) & (u >= 0) & (u < out_width)).astype(w_hwio.dtype)  # (kw, inW, outW)
    bw = jnp.einsum("xuw,hxio->huiwo", sel, w_hwio)  # (kh, inW, cin, outW, cout)
    return bw.reshape(kh, in_width * cin, out_width * cout)


def prepare_decoder_params(params, c_up, width):
    """Build the fused banded weights / packed biases ONCE per parameter set.
    NOTE: banded weights use O((W*C)^2) bytes and ~W/3 redundant FLOPs; fine for
    small W (MXU is idle anyway), for W >~ 32-64 use W-tiled bands instead."""
    w1, w2, b1, b2 = params["w1"], params["w2"], params["b1"], params["b2"]
    c_out = b1.shape[0]
    wc = width * c_out

    bw1u = _band_weights(w1[:, :, :c_up, :], width // 2, width, upsample_w=True)
    bw1s = _band_weights(w1[:, :, c_up:, :], width, width, upsample_w=False)
    bw1 = jnp.concatenate([bw1u, bw1s], axis=1)            # (3, K_in, wc)
    bw1f = jnp.transpose(bw1, (1, 0, 2)).reshape(bw1.shape[1], 3 * wc)

    bw2 = _band_weights(w2, width, width, upsample_w=False)  # (3, wc, wc)
    bw2f = jnp.transpose(bw2, (1, 0, 2)).reshape(wc, 3 * wc)

    return {
        "bw1": bw1f.astype(jnp.bfloat16),
        "bw2": bw2f.astype(jnp.bfloat16),
        "b1": jnp.tile(b1, width).reshape(1, wc).astype(jnp.float32),
        "b2": jnp.tile(b2, width).reshape(1, wc).astype(jnp.float32),
    }


def decoder_block_forward(inputs_nchw, skip_nchw, prep):
    """Matches DecoderBlock.forward semantics (NCHW in / NCHW out)."""
    n, c_up, h_half, w_half = inputs_nchw.shape
    _, c_skip, height, width = skip_nchw.shape
    assert height == 2 * h_half and width == 2 * w_half
    wc = prep["b1"].shape[1]
    c_out = wc // width
    k_in = prep["bw1"].shape[0]

    # Only the H-direction nearest-neighbour replication is materialized (on
    # the small pre-upsample tensor); W replication lives in the band weights.
    xu = jnp.transpose(inputs_nchw, (0, 2, 3, 1))                      # (N,H/2,W/2,Cup)
    xu = jnp.repeat(xu, 2, axis=1).reshape(n, height, w_half * c_up)   # (N,H,W/2*Cup)
    sk = jnp.transpose(skip_nchw, (0, 2, 3, 1)).reshape(n, height, width * c_skip)
    x_pk = jnp.concatenate([xu, sk], axis=-1)                          # (N,H,K_in)

    # 'same' padding along H: 2 zero rows on top; pad the bottom so the row
    # count is a multiple of 8 (sublane-tile aligned DMA block, >=2 zero rows).
    rows = ((height + 4 + 7) // 8) * 8
    x_pk = jnp.pad(x_pk, ((0, 0), (2, rows - height - 2), (0, 0)))
    x_pk = x_pk.astype(jnp.bfloat16)

    # Fewer, fatter grid steps to amortize per-step overhead, but keep >= 2
    # parallel steps so both v7x TensorCores stay busy.
    b_tile = max(1, n // 2) if (n >= 2 and n % 2 == 0) else 1

    y_pk = pl.pallas_call(
        _decoder_block_kernel,
        out_shape=jax.ShapeDtypeStruct((n, height, wc), inputs_nchw.dtype),
        grid_spec=pltpu.PrefetchScalarGridSpec(
            num_scalar_prefetch=0,
            grid=(n // b_tile,),
            in_specs=[
                pl.BlockSpec((b_tile, rows, k_in), lambda i: (i, 0, 0)),
                pl.BlockSpec((k_in, 3 * wc), lambda i: (0, 0)),
                pl.BlockSpec((wc, 3 * wc), lambda i: (0, 0)),
                pl.BlockSpec((1, wc), lambda i: (0, 0)),
                pl.BlockSpec((1, wc), lambda i: (0, 0)),
            ],
            out_specs=pl.BlockSpec((b_tile, height, wc), lambda i: (i, 0, 0)),
        ),
        compiler_params=pltpu.CompilerParams(
            dimension_semantics=("parallel",),
            vmem_limit_bytes=32 * 1024 * 1024),
    )(x_pk, prep["bw1"], prep["bw2"], prep["b1"], prep["b2"])

    y = y_pk.reshape(n, height, width, c_out)          # free unpack of W*C lanes
    return jnp.transpose(y, (0, 3, 1, 2))              # NHWC -> NCHW


def _reference_forward(inputs_nchw, skip_nchw, params):
    """Pure-JAX f32 reference (lax conv) for correctness checking."""
    x = jnp.repeat(jnp.repeat(inputs_nchw, 2, axis=2), 2, axis=3)
    x = jnp.concatenate([x, skip_nchw], axis=1)

    def conv(x_nchw, w_hwio, b):
        w_oihw = jnp.transpose(w_hwio, (3, 2, 0, 1))
        y = lax.conv_general_dilated(
            x_nchw, w_oihw, window_strides=(1, 1), padding="SAME",
            dimension_numbers=("NCHW", "OIHW", "NCHW"))
        return jnp.maximum(y + b[None, :, None, None], 0.0)

    y = conv(x, params["w1"], params["b1"])
    y = conv(y, params["w2"], params["b2"])
    return y


if __name__ == "__main__":
    key = jax.random.PRNGKey(0)
    k_in, k_skip, k_w1, k_b1, k_w2, k_b2 = jax.random.split(key, 6)

    # Shapes: inputs (N, C_up, H/2, W/2), skip (N, C_skip, H, W).
    # conv_1 in_channels = C_up + C_skip = 8, out_channels = 8 (W*C_out = 128).
    N, C_up, C_skip, H, W = 2, 4, 4, 16, 16
    C_in = C_up + C_skip
    C_out = 8

    inputs = jax.random.normal(k_in, (N, C_up, H // 2, W // 2), jnp.float32)
    skip = jax.random.normal(k_skip, (N, C_skip, H, W), jnp.float32)

    params = {
        "w1": 0.1 * jax.random.normal(k_w1, (3, 3, C_in, C_out), jnp.float32),
        "b1": 0.1 * jax.random.normal(k_b1, (C_out,), jnp.float32),
        "w2": 0.1 * jax.random.normal(k_w2, (3, 3, C_out, C_out), jnp.float32),
        "b2": 0.1 * jax.random.normal(k_b2, (C_out,), jnp.float32),
    }

    # Banded weights / packed biases built once, outside the jitted forward.
    prep = prepare_decoder_params(params, C_up, W)
    prep = jax.tree_util.tree_map(jax.block_until_ready, prep)

    out = jax.jit(decoder_block_forward)(inputs, skip, prep)
    out = jax.block_until_ready(out)

    ref = _reference_forward(inputs, skip, params)
    assert out.shape == (N, C_out, H, W), out.shape
    # bf16 matmul operands (f32 accumulation) -> looser tolerance than pure f32.
    assert jnp.allclose(out, ref, atol=5e-2, rtol=5e-2), float(
        jnp.max(jnp.abs(out - ref)))

    print("KERNEL_OK")
</pallas_src>

<mosaic_0001>
module attributes {stable_mosaic.version = 11 : i64} {
  func.func @_decoder_block_kernel(%arg0: i32, %arg1: memref<1x24x96xbf16, #tpu.memory_space<vmem>>, %arg2: memref<96x384xbf16, #tpu.memory_space<vmem>>, %arg3: memref<128x384xbf16, #tpu.memory_space<vmem>>, %arg4: memref<1x128xf32, #tpu.memory_space<vmem>>, %arg5: memref<1x128xf32, #tpu.memory_space<vmem>>, %arg6: memref<1x16x128xf32, #tpu.memory_space<vmem>>) attributes {dimension_semantics = [#tpu.dimension_semantics<parallel>], iteration_bounds = array<i64: 2>, scalar_prefetch = 0 : i64, scratch_operands = 0 : i64, tpu.core_type = #tpu.core_type<tc>, window_params = [{transform_indices = @transform_0, window_bounds = array<i64: 1, 24, 96>}, {pipeline_mode = #tpu.pipeline_mode<synchronous>, transform_indices = @transform_1, window_bounds = array<i64: 96, 384>}, {pipeline_mode = #tpu.pipeline_mode<synchronous>, transform_indices = @transform_2, window_bounds = array<i64: 128, 384>}, {pipeline_mode = #tpu.pipeline_mode<synchronous>, transform_indices = @transform_3, window_bounds = array<i64: 1, 128>}, {pipeline_mode = #tpu.pipeline_mode<synchronous>, transform_indices = @transform_4, window_bounds = array<i64: 1, 128>}, {transform_indices = @transform_5, window_bounds = array<i64: 1, 16, 128>}]} {
    %c0 = arith.constant 0 : index
    %c0_0 = arith.constant 0 : index
    %0 = vector.load %arg2[%c0, %c0_0] : memref<96x384xbf16, #tpu.memory_space<vmem>>, vector<96x384xbf16>
    %c0_1 = arith.constant 0 : index
    %c0_2 = arith.constant 0 : index
    %1 = vector.load %arg3[%c0_1, %c0_2] : memref<128x384xbf16, #tpu.memory_space<vmem>>, vector<128x384xbf16>
    %c0_3 = arith.constant 0 : index
    %c0_4 = arith.constant 0 : index
    %2 = vector.load %arg4[%c0_3, %c0_4] : memref<1x128xf32, #tpu.memory_space<vmem>>, vector<1x128xf32>
    %c0_5 = arith.constant 0 : index
    %c0_6 = arith.constant 0 : index
    %3 = vector.load %arg5[%c0_5, %c0_6] : memref<1x128xf32, #tpu.memory_space<vmem>>, vector<1x128xf32>
    %4 = tpu.iota {dimensions = array<i32: 0>} : vector<22x1xi32>
    %c1_i32 = arith.constant 1 : i32
    %5 = vector.broadcast %c1_i32 : i32 to vector<22x1xi32>
    %6 = arith.cmpi sge, %4, %5 : vector<22x1xi32>
    %c16_i32 = arith.constant 16 : i32
    %7 = vector.broadcast %c16_i32 : i32 to vector<22x1xi32>
    %8 = arith.cmpi sle, %4, %7 : vector<22x1xi32>
    %9 = arith.andi %6, %8 : vector<22x1xi1>
    %c0_7 = arith.constant 0 : index
    %c0_8 = arith.constant 0 : index
    %c0_9 = arith.constant 0 : index
    %10 = vector.load %arg1[%c0_7, %c0_8, %c0_9] : memref<1x24x96xbf16, #tpu.memory_space<vmem>>, vector<1x24x96xbf16>
    %11 = vector.shape_cast %10 : vector<1x24x96xbf16> to vector<24x96xbf16>
    %cst = arith.constant dense<0.000000e+00> : vector<24x384xf32>
    %12 = tpu.matmul %11, %0, %cst {dimension_numbers = #tpu.dot_dimension_numbers<[1], [0], [0], [1], [0, 0, 1, 1], [], []>} : vector<24x96xbf16>, vector<96x384xbf16>, vector<24x384xf32> -> vector<24x384xf32>
    %13 = vector.extract_strided_slice %12 {offsets = [0, 0], sizes = [22, 128], strides = [1, 1]} : vector<24x384xf32> to vector<22x128xf32>
    %14 = vector.extract_strided_slice %12 {offsets = [1, 128], sizes = [22, 128], strides = [1, 1]} : vector<24x384xf32> to vector<22x128xf32>
    %15 = arith.addf %13, %14 : vector<22x128xf32>
    %16 = vector.extract_strided_slice %12 {offsets = [2, 256], sizes = [22, 128], strides = [1, 1]} : vector<24x384xf32> to vector<22x128xf32>
    %17 = arith.addf %15, %16 : vector<22x128xf32>
    %18 = vector.broadcast %2 : vector<1x128xf32> to vector<22x128xf32>
    %19 = arith.addf %17, %18 : vector<22x128xf32>
    %cst_10 = arith.constant 0.000000e+00 : f32
    %20 = vector.broadcast %cst_10 : f32 to vector<22x128xf32>
    %21 = arith.maximumf %19, %20 : vector<22x128xf32>
    %cst_11 = arith.constant 0.000000e+00 : f32
    %22 = vector.shape_cast %9 : vector<22x1xi1> to vector<22x1xi1>
    %23 = vector.broadcast %22 : vector<22x1xi1> to vector<22x128xi1>
    %24 = vector.broadcast %cst_11 : f32 to vector<22x128xf32>
    %25 = arith.select %23, %21, %24 : vector<22x128xi1>, vector<22x128xf32>
    %26 = arith.truncf %25 : vector<22x128xf32> to vector<22x128xbf16>
    %cst_12 = arith.constant dense<0.000000e+00> : vector<22x384xf32>
    %27 = tpu.matmul %26, %1, %cst_12 {dimension_numbers = #tpu.dot_dimension_numbers<[1], [0], [0], [1], [0, 0, 1, 1], [], []>} : vector<22x128xbf16>, vector<128x384xbf16>, vector<22x384xf32> -> vector<22x384xf32>
    %28 = vector.extract_strided_slice %27 {offsets = [0, 0], sizes = [16, 128], strides = [1, 1]} : vector<22x384xf32> to vector<16x128xf32>
    %29 = vector.extract_strided_slice %27 {offsets = [1, 128], sizes = [16, 128], strides = [1, 1]} : vector<22x384xf32> to vector<16x128xf32>
    %30 = arith.addf %28, %29 : vector<16x128xf32>
    %31 = vector.extract_strided_slice %27 {offsets = [2, 256], sizes = [16, 128], strides = [1, 1]} : vector<22x384xf32> to vector<16x128xf32>
    %32 = arith.addf %30, %31 : vector<16x128xf32>
    %33 = vector.broadcast %3 : vector<1x128xf32> to vector<16x128xf32>
    %34 = arith.addf %32, %33 : vector<16x128xf32>
    %cst_13 = arith.constant 0.000000e+00 : f32
    %35 = vector.broadcast %cst_13 : f32 to vector<16x128xf32>
    %36 = arith.maximumf %34, %35 : vector<16x128xf32>
    %c0_14 = arith.constant 0 : index
    %c0_15 = arith.constant 0 : index
    %c0_16 = arith.constant 0 : index
    %37 = vector.load %arg6[%c0_14, %c0_15, %c0_16] : memref<1x16x128xf32, #tpu.memory_space<vmem>>, vector<1x16x128xf32>
    %38 = vector.shape_cast %37 : vector<1x16x128xf32> to vector<16x128xf32>
    %39 = vector.shape_cast %36 : vector<16x128xf32> to vector<1x16x128xf32>
    tpu.vector_store %arg6[%c0_14, %c0_15, %c0_16], %39 {strides = array<i32>} : memref<1x16x128xf32, #tpu.memory_space<vmem>>, vector<1x16x128xf32>,
    return
  }
  func.func @transform_0(%arg0: i32) -> (i32, i32, i32) {
    %c0_i32 = arith.constant 0 : i32
    %c0_i32_0 = arith.constant 0 : i32
    %c0_i32_1 = arith.constant 0 : i32
    return %arg0, %c0_i32, %c0_i32_0 : i32, i32, i32
  }
  func.func @transform_1(%arg0: i32) -> (i32, i32) {
    %c0_i32 = arith.constant 0 : i32
    %c0_i32_0 = arith.constant 0 : i32
    %c0_i32_1 = arith.constant 0 : i32
    return %c0_i32, %c0_i32_0 : i32, i32
  }
  func.func @transform_2(%arg0: i32) -> (i32, i32) {
    %c0_i32 = arith.constant 0 : i32
    %c0_i32_0 = arith.constant 0 : i32
    %c0_i32_1 = arith.constant 0 : i32
    return %c0_i32, %c0_i32_0 : i32, i32
  }
  func.func @transform_3(%arg0: i32) -> (i32, i32) {
    %c0_i32 = arith.constant 0 : i32
    %c0_i32_0 = arith.constant 0 : i32
    %c0_i32_1 = arith.constant 0 : i32
    return %c0_i32, %c0_i32_0 : i32, i32
  }
  func.func @transform_4(%arg0: i32) -> (i32, i32) {
    %c0_i32 = arith.constant 0 : i32
    %c0_i32_0 = arith.constant 0 : i32
    %c0_i32_1 = arith.constant 0 : i32
    return %c0_i32, %c0_i32_0 : i32, i32
  }
  func.func @transform_5(%arg0: i32) -> (i32, i32, i32) {
    %c0_i32 = arith.constant 0 : i32
    %c0_i32_0 = arith.constant 0 : i32
    %c0_i32_1 = arith.constant 0 : i32
    return %arg0, %c0_i32, %c0_i32_0 : i32, i32, i32
  }
}

</mosaic_0001>

<bundles_post_ra>
// kernel: decoder_block_forward.1
= control target key start
LH: loop header
LB: loop body
LE: loop exit
PB: predicated region body
PF: predicated region fallthrough
CT: control target
= control target key end

     0   :  { %s1116_s18 = smov 0   ;;  %s1285_s0 = inlined_call_operand.vmem [shape: bf16[2,24,96], index: 0, kind: input, shape index: {}]   ;;  %s1286_s1 = inlined_call_operand.vmem [shape: bf16[96,384], index: 1, kind: input, shape index: {}]   ;;  %s1287_s2 = inlined_call_operand.vmem [shape: bf16[128,384], index: 2, kind: input, shape index: {}]   ;;  %s1288_s3 = inlined_call_operand.vmem [shape: f32[1,128], index: 3, kind: input, shape index: {}]   ;;  %s1289_s4 = inlined_call_operand.vmem [shape: f32[1,128], index: 4, kind: input, shape index: {}]   ;;  %s1290_s5 = inlined_call_operand.vmem [shape: f32[2,16,128], index: 5, kind: output, shape index: {}]  }
   0x1 LB: > { %s880_s19 = sadd.s32 4294967295, %s1082_s18   ;;  %p884_p0 = scmp.ge.s32.totalorder %s1082_s18, 1  ;;  %s1082_s18 = sphi %s1116_s18, %s15_s18  }
   0x2   : > { %p187_p1 = scmp.lt.s32.totalorder %s1082_s18, 3 }
   0x4   : > { %p188_p2 = pnand %p884_p0, %p187_p1 }
   0x5   : > { %v1018_v0 = vld [vmem:[%s1286_s1 + $0x4] ss:$12 sps:$4 sm:$0xff] (!%p188_p2)   ;;  %p215_p3 = scmp.lt.s32.totalorder (!%p188_p2), %s880_s19, 1  ;;  %v1020_v1 = vld [vmem:[%s1286_s1] ss:$12 sps:$4 sm:$0xff] (!%p188_p2)   ;;  %v1084_v2 = vmov (!%p188_p2), 0   ;;  %v284_v59 = vlaneseq (!%p188_p2) }
   0x6   : > { %191 = sbr.rel (%p188_p2) target bundleno = 497 (0x1f1), region = 40  ;;  %443 = vmatprep.mubr.bf16.mxu0 (!%p188_p2), %v1084_v2  ;;  %411 = vmatprep.subr.bf16.mxu0 (!%p188_p2), %v1018_v0  ;;  %v1021_v3 = vld [vmem:[%s1286_s1 + $0x8] ss:$12 sps:$4 sm:$0xff] (!%p188_p2)   ;;  %v1024_v5 = vld [vmem:[%s1286_s1 + $0x18] ss:$12 sps:$4 sm:$0xff] (!%p188_p2)   ;;  %vm404_vm0 = vcmask (!%p188_p2), 785408  }
   0x7   : > { %412 = vmatpush1.bf16.msra.mxu0 (!%p188_p2), %v1020_v1  ;;  %v1022_v4 = vld [vmem:[%s1286_s1 + $0x1c] ss:$12 sps:$4 sm:$0xff] (!%p188_p2)   ;;  %971 = vmatprep.subr.bf16.mxu1 (!%p188_p2), %v1021_v3  ;;  %v1025_v6 = vld [vmem:[%s1286_s1 + $0x20] ss:$12 sps:$4 sm:$0xff] (!%p188_p2)   ;;  %v1029_v8 = vld [vmem:[%s1286_s1 + $0x38] ss:$12 sps:$4 sm:$0xff] (!%p188_p2)  }
   0x8   : > { %972 = vmatpush3.bf16.msra.mxu1 (!%p188_p2), %v1021_v3  ;;  %413 = vmatprep.subr.bf16.mxu0 (!%p188_p2), %v1022_v4  ;;  %v1026_v7 = vld [vmem:[%s1286_s1 + $0x34] ss:$12 sps:$4 sm:$0xff] (!%p188_p2)   ;;  %v1028_v9 = vld [vmem:[%s1286_s1 + $0x30] ss:$12 sps:$4 sm:$0xff] (!%p188_p2)   ;;  %v1030_v10 = vld [vmem:[%s1286_s1 + $0x4c] ss:$12 sps:$4 sm:$0xff] (!%p188_p2)  }
   0x9   : > { %973 = vmatprep.subr.bf16.mxu1 (!%p188_p2), %v1025_v6  ;;  %v1033_v11 = vld [vmem:[%s1286_s1 + $0x50] ss:$12 sps:$4 sm:$0xff] (!%p188_p2)   ;;  %v1032_v12 = vld [vmem:[%s1286_s1 + $0x48] ss:$12 sps:$4 sm:$0xff] (!%p188_p2)   ;;  %v1036_v16 = vld [vmem:[%s1286_s1 + $0x60] ss:$12 sps:$4 sm:$0xff] (!%p188_p2)  }
   0xa   : > { %v1034_v13 = vld [vmem:[%s1286_s1 + $0x64] ss:$12 sps:$4 sm:$0xff] (!%p188_p2)   ;;  %v1037_v14 = vld [vmem:[%s1286_s1 + $0x68] ss:$12 sps:$4 sm:$0xff] (!%p188_p2)   ;;  %v1041_v18 = vld [vmem:[%s1286_s1 + $0x80] ss:$12 sps:$4 sm:$0xff] (!%p188_p2)  }
   0xb   : > { %414 = vmatpush1.bf16.msra.mxu0 (!%p188_p2), %v1024_v5  ;;  %v1038_v17 = vld [vmem:[%s1286_s1 + $0x7c] ss:$12 sps:$4 sm:$0xff] (!%p188_p2)   ;;  %v1040_v19 = vld [vmem:[%s1286_s1 + $0x78] ss:$12 sps:$4 sm:$0xff] (!%p188_p2)   ;;  %v1044_v21 = vld [vmem:[%s1287_s2] ss:$12 sps:$4 sm:$0xff] (!%p188_p2)  }
   0xc   : > { %415 = vmatprep.subr.bf16.mxu0 (!%p188_p2), %v1026_v7  ;;  %974 = vmatpush3.bf16.msra.mxu1 (!%p188_p2), %v1025_v6  ;;  %v1046_v20 = vld [vmem:[%s1287_s2 + $0x4] ss:$12 sps:$4 sm:$0xff] (!%p188_p2)   ;;  %v1047_v22 = vld [vmem:[%s1287_s2 + $0x8] ss:$12 sps:$4 sm:$0xff] (!%p188_p2)   ;;  %v1051_v25 = vld [vmem:[%s1287_s2 + $0x20] ss:$12 sps:$4 sm:$0xff] (!%p188_p2)  }
   0xd   : > { %s1292_s19 = smov (!%p215_p3, %s880_s19), 1  ;;  %975 = vmatprep.subr.bf16.mxu1 %v1029_v8  ;;  %v1050_v24 = vld [vmem:[%s1287_s2 + $0x1c] ss:$12 sps:$4 sm:$0xff]   ;;  %v1048_v26 = vld [vmem:[%s1287_s2 + $0x18] ss:$12 sps:$4 sm:$0xff]   ;;  %vm513_vm1 = vcmask 1046528  }
   0xe   : > { %s1007_s13 = smul.u32 12, %s1292_s19  ;;  %v1054_v27 = vld [vmem:[%s1287_s2 + $0x34] ss:$12 sps:$4 sm:$0xff]   ;;  %v1052_v28 = vld [vmem:[%s1287_s2 + $0x30] ss:$12 sps:$4 sm:$0xff]   ;;  %vm528_vm2 = vcmask 1045504  }
   0xf   : > { %416 = vmatpush1.bf16.msra.mxu0 %v1028_v9  ;;  %v1055_v29 = vld [vmem:[%s1287_s2 + $0x38] ss:$12 sps:$4 sm:$0xff]   ;;  %v1056_v31 = vld [vmem:[%s1287_s2 + $0x48] ss:$12 sps:$4 sm:$0xff]   ;;  %v1059_v32 = vld [vmem:[%s1287_s2 + $0x50] ss:$12 sps:$4 sm:$0xff]  }
  0x10   : > { %s219_s24 = scalar_lea.vmem %s1285_s0, %s1007_s13  ;;  %417 = vmatprep.subr.bf16.mxu0 %v1030_v10  ;;  %976 = vmatpush3.bf16.msra.mxu1 %v1029_v8  ;;  %v1058_v30 = vld [vmem:[%s1287_s2 + $0x4c] ss:$12 sps:$4 sm:$0xff]   ;;  %v1062_v33 = vld [vmem:[%s1287_s2 + $0x64] ss:$12 sps:$4 sm:$0xff]   ;;  %v1063_v35 = vld [vmem:[%s1287_s2 + $0x68] ss:$12 sps:$4 sm:$0xff]  }
  0x11   : > { %977 = vmatprep.subr.bf16.mxu1 %v1033_v11  ;;  %v1042_v15 = vld [vmem:[%s219_s24] sm:$0xff]   ;;  %v1043_v23 = vld [vmem:[%s219_s24 + $0x8] ss:$0 sps:$4 sm:$0xff]   ;;  %v1068_v40 = vld [vmem:[%s1287_s2 + $0x90] ss:$12 sps:$4 sm:$0xff]   ;;  %v285_v5 = vshrl.u32 %v284_v59, 7 }
  0x12   : > { %983 = vmatprep.mubr.msk.bf16.mxu1 %vm404_vm0, %v1042_v15  ;;  %v1060_v34 = vld [vmem:[%s1287_s2 + $0x60] ss:$12 sps:$4 sm:$0xff]   ;;  %v1066_v36 = vld [vmem:[%s1287_s2 + $0x7c] ss:$12 sps:$4 sm:$0xff]   ;;  %v1064_v37 = vld [vmem:[%s1287_s2 + $0x78] ss:$12 sps:$4 sm:$0xff]  }
  0x13   : > { %418 = vmatpush1.bf16.msra.mxu0 %v1032_v12  ;;  %v1067_v38 = vld [vmem:[%s1287_s2 + $0x80] ss:$12 sps:$4 sm:$0xff]   ;;  %v1071_v41 = vld [vmem:[%s1287_s2 + $0x98] ss:$12 sps:$4 sm:$0xff]   ;;  %v1072_v43 = vld [vmem:[%s1287_s2 + $0xa8] ss:$12 sps:$4 sm:$0xff]  }
  0x14   : > { %419 = vmatprep.subr.bf16.mxu0 %v1034_v13  ;;  %978 = vmatpush3.bf16.msra.mxu1 %v1033_v11  ;;  %v1070_v39 = vld [vmem:[%s1287_s2 + $0x94] ss:$12 sps:$4 sm:$0xff]   ;;  %v1074_v42 = vld [vmem:[%s1287_s2 + $0xac] ss:$12 sps:$4 sm:$0xff]   ;;  %v1075_v44 = vld [vmem:[%s1287_s2 + $0xb0] ss:$12 sps:$4 sm:$0xff]  }
  0x15   : > { %979 = vmatprep.subr.bf16.mxu1 %v1037_v14  ;;  %v912_v7 = vld [vmem:[%s1288_s3] ss:$0 sm:$0xff]  ;;  %v287_v12 = vadd.s32 16, %v285_v5  ;;  %vm288_vm3 = vcmp.ge.s32.totalorder %v285_v5, 1  ;;  %vm1085_vm5 = vmmov 1   ;;  %s952_s20 = sshll.u32 %s1292_s19, 4 }
  0x16   : > { %vm937_vm6 = vmpackc.low %vm1085_vm5, %vm288_vm3  ;;  %s224_s23 = scalar_lea.vmem %s1290_s5, %s952_s20 }
  0x17   : > { %420 = vmatpush1.bf16.msra.mxu0 %v1036_v16  ;;  %vm293_vm4 = vcmp.le.s32.totalorder %v287_v12, 16 }
  0x18   : > { %421 = vmatprep.subr.bf16.mxu0 %v1038_v17  ;;  %980 = vmatpush3.bf16.msra.mxu1 %v1037_v14  ;;  %vm940_vm7 = vmpackc.low %vm293_vm4, %vm293_vm4 }
  0x19   : > { %981 = vmatprep.subr.bf16.mxu1 %v1041_v18 }
  0x1b   : > { %422 = vmatpush1.bf16.msra.mxu0 %v1040_v19 }
  0x1c   : > { %691 = vmatprep.subr.bf16.mxu0 %v1046_v20  ;;  %982 = vmatpush3.bf16.msra.mxu1 %v1041_v18 }
  0x1d   : > { %987 = vmatprep.subr.bf16.mxu1 %v1047_v22 }
  0x1e   : > { %908 = vmatmul.mubr.msk.bf16.vlgmr.msra.gmra.mrb[0].mxu0 %vm404_vm0, %v1042_v15 }
  0x1f   : > { %453 = vmatprep.mubr.bf16.mxu0 %v1084_v2  ;;  %692 = vmatpush1.bf16.msra.mxu0 %v1044_v21 }
  0x20   : > { %984 = vmatmul.mubr.msk.bf16.vlgmr.msra.gmra.mrb[0].mxu1 %vm404_vm0, %v1043_v23  ;;  %693 = vmatprep.subr.bf16.mxu0 %v1050_v24 }
  0x21   : > { %988 = vmatpush3.bf16.msra.mxu1 %v1047_v22 }
  0x22   : > { %989 = vmatprep.subr.bf16.mxu1 %v1051_v25 }
  0x23   : > { %694 = vmatpush1.bf16.msra.mxu0 %v1048_v26 }
  0x24   : > { %695 = vmatprep.subr.bf16.mxu0 %v1054_v27 }
  0x25   : > { %990 = vmatpush3.bf16.msra.mxu1 %v1051_v25 }
  0x26   : > { %909 = vmatmul.mubr.msk.bf16.gmra.mrb[4].mxu0 %vm404_vm0, %v1043_v23  ;;  %991 = vmatprep.subr.bf16.mxu1 %v1055_v29 }
  0x27   : > { %696 = vmatpush1.bf16.msra.mxu0 %v1052_v28  ;;  %723 = vmatprep.mubr.bf16.mxu0 %v1084_v2 }
  0x28   : > { %697 = vmatprep.subr.bf16.mxu0 %v1058_v30 }
  0x29   : > { %992 = vmatpush3.bf16.msra.mxu1 %v1055_v29 }
  0x2a   : > { %993 = vmatprep.subr.bf16.mxu1 %v1059_v32 }
  0x2b   : > { %698 = vmatpush1.bf16.msra.mxu0 %v1056_v31 }
  0x2c   : > { %699 = vmatprep.subr.bf16.mxu0 %v1062_v33 }
  0x2d   : > { %994 = vmatpush3.bf16.msra.mxu1 %v1059_v32 }
  0x2e   : > { %995 = vmatprep.subr.bf16.mxu1 %v1063_v35 }
  0x2f   : > { %700 = vmatpush1.bf16.msra.mxu0 %v1060_v34 }
  0x30   : > { %701 = vmatprep.subr.bf16.mxu0 %v1066_v36 }
  0x31   : > { %996 = vmatpush3.bf16.msra.mxu1 %v1063_v35 }
  0x32   : > { %997 = vmatprep.subr.bf16.mxu1 %v1067_v38 }
  0x33   : > { %702 = vmatpush1.bf16.msra.mxu0 %v1064_v37 }
  0x34   : > { %703 = vmatprep.subr.bf16.mxu0 %v1070_v39 }
  0x35   : > { %998 = vmatpush3.bf16.msra.mxu1 %v1067_v38  ;;  %v949_v38 = vld [vmem:[%s1289_s4] ss:$0 sm:$0xff] }
  0x36   : > { %999 = vmatprep.subr.bf16.mxu1 %v1071_v41 }
  0x37   : > { %704 = vmatpush1.bf16.msra.mxu0 %v1068_v40 }
  0x38   : > { %705 = vmatprep.subr.bf16.mxu0 %v1074_v42 }
  0x39   : > { %1000 = vmatpush3.bf16.msra.mxu1 %v1071_v41 }
  0x3a   : > { %1001 = vmatprep.subr.bf16.mxu1 %v1075_v44 }
  0x3b   : > { %706 = vmatpush1.bf16.msra.mxu0 %v1072_v43 }
  0x3d   : > { %1002 = vmatpush3.bf16.msra.mxu1 %v1075_v44 }
  0xf1   : > { %v445_v45 = vpop.f32.mrb[0].mxu0 }
  0xf2   : > { %v447_v46 = vpop.f32.mrb[1].mxu0 }
  0xf3   : > { %v449_v47 = vpop.f32.mrb[2].mxu0  ;;  %v985_v48 = vpop.f32.mrb[0].mxu1  ;;  %v514_v51 = vrot.slane %v447_v46, 1 }
  0xf4   : > { %v451_v49 = vpop.f32.mrb[3].mxu0  ;;  %v496_v50 = vpop.f32.mrb[1].mxu1  ;;  %v532_v52 = vrot.slane %v985_v48, 2 }
  0xf5   : > { %v515_v53 = vrot.slane %v451_v49, 1  ;;  %v529_v54 = vrot.slane %v496_v50, 2  ;;  %v986_v55 = vpop.f32.mrb[2].mxu1 }
  0xf6   : > { %v499_v56 = vpop.f32.mrb[3].mxu1 }
  0xf7   : > { %v516_v57 = vsel %vm513_vm1, %v514_v51, %v515_v53  ;;  %v530_v58 = vrot.slane %v499_v56, 2 }
  0xf8   : > { %v522_v60 = vadd.f32 %v516_v57, %v445_v45 }
  0xf9   : > { %v531_v61 = vsel %vm528_vm2, %v529_v54, %v530_v58  ;;  %v533_v62 = vsel %vm528_vm2, %v530_v58, %v532_v52  ;;  %v455_v63 = vpop.f32.mrb[4].mxu0 }
  0xfa   : > { %v537_v0 = vadd.f32 %v531_v61, %v522_v60  ;;  %v457_v1 = vpop.f32.mrb[5].mxu0 }
  0xfb   : > { %v517_v3 = vrot.slane %v457_v1, 1  ;;  %v459_v4 = vpop.f32.mrb[6].mxu0 }
  0xfc   : > { %v460_v6 = vpop.f32.mrb[7].mxu0  ;;  %v546_v13 = vadd.f32 %v912_v7, %v537_v0 }
  0xfd   : > { %v518_v8 = vsel %vm513_vm1, %v515_v53, %v517_v3  ;;  %v524_v9 = vadd.f32 %v517_v3, %v455_v63 }
  0xfe   : > { %v523_v10 = vadd.f32 %v518_v8, %v449_v47  ;;  %v549_v18 = vmax.f32 %v546_v13, 0.0 }
  0xff   : > { %v539_v11 = vadd.f32 %v532_v52, %v524_v9 }
 0x100   : > { %v538_v14 = vadd.f32 %v533_v62, %v523_v10 }
 0x101   : > { %v548_v15 = vadd.f32 %v912_v7, %v539_v11 }
 0x102   : > { %v547_v16 = vadd.f32 %v912_v7, %v538_v14 }
 0x103   : > { %v551_v17 = vmax.f32 %v548_v15, 0.0 }
 0x104   : > { %v550_v19 = vmax.f32 %v547_v16, 0.0 }
 0x105   : > { %v941_v21 = vpack.c.bf16 %v551_v17, %v551_v17 }
 0x106   : > { %v938_v20 = vpack.c.bf16 %v550_v19, %v549_v18 }
 0x108   : > { %939 = vmatmul.mubr.msk.bf16.vlgmr.msra.gmra.mrb[8].mxu0 %vm937_vm6, %v938_v20  ;;  %1003 = vmatprep.mubr.msk.bf16.mxu1 %vm937_vm6, %v938_v20 }
 0x109   : > { %1004 = vmatmul.mubr.msk.bf16.vlgmr.msra.gmra.mrb[4].mxu1 %vm940_vm7, %v941_v21  ;;  %733 = vmatprep.mubr.bf16.mxu0 %v1084_v2 }
 0x110   : > { %942 = vmatmul.mubr.msk.bf16.gmra.mrb[12].mxu0 %vm940_vm7, %v941_v21 }
 0x1db   : > { %v725_v22 = vpop.f32.mrb[8].mxu0 }
 0x1dc   : > { %v727_v23 = vpop.f32.mrb[9].mxu0  ;;  %v1005_v24 = vpop.f32.mrb[4].mxu1 }
 0x1dd   : > { %v729_v25 = vpop.f32.mrb[10].mxu0  ;;  %v775_v26 = vpop.f32.mrb[5].mxu1  ;;  %v792_v29 = vrot.slane %v727_v23, 1  ;;  %v807_v32 = vrot.slane %v1005_v24, 2 }
 0x1de   : > { %v731_v27 = vpop.f32.mrb[11].mxu0  ;;  %v1006_v28 = vpop.f32.mrb[6].mxu1  ;;  %v804_v33 = vrot.slane %v775_v26, 2 }
 0x1df   : > { %v793_v30 = vrot.slane %v731_v27, 1  ;;  %v778_v31 = vpop.f32.mrb[7].mxu1 }
 0x1e0   : > { %v805_v34 = vrot.slane %v778_v31, 2 }
 0x1e1   : > { %v794_v35 = vsel %vm513_vm1, %v792_v29, %v793_v30 }
 0x1e2   : > { %v799_v36 = vadd.f32 %v794_v35, %v725_v22  ;;  %v806_v2 = vsel %vm528_vm2, %v804_v33, %v805_v34  ;;  %v808_v37 = vsel %vm528_vm2, %v805_v34, %v807_v32 }
 0x1e3   : > { %v735_v39 = vpop.f32.mrb[12].mxu0 }
 0x1e4   : > { %v811_v40 = vadd.f32 %v806_v2, %v799_v36  ;;  %v736_v41 = vpop.f32.mrb[13].mxu0 }
 0x1e5   : > { %v795_v42 = vrot.slane %v736_v41, 1  ;;  %v738_v43 = vpop.f32.mrb[14].mxu0 }
 0x1e6   : > { %v819_v44 = vadd.f32 %v949_v38, %v811_v40  ;;  %v739_v45 = vpop.f32.mrb[15].mxu0 }
 0x1e7   : > { %v796_v46 = vsel %vm513_vm1, %v793_v30, %v795_v42 }
 0x1e8   : > { %v821_v47 = vmax.f32 %v819_v44, 0.0  ;;  %v800_v48 = vadd.f32 %v796_v46, %v729_v25 }
 0x1ea   : > { %823 = vst [vmem:[%s224_s23] sm:$0xff] %v821_v47  ;;  %v812_v49 = vadd.f32 %v808_v37, %v800_v48 }
 0x1ec   : > { %v820_v50 = vadd.f32 %v949_v38, %v812_v49 }
 0x1ee   : > { %v822_v51 = vmax.f32 %v820_v50, 0.0 }
 0x1f0   : > { %824 = vst [vmem:[%s224_s23 + $0x8] sm:$0xff] %v822_v51 }
 0x1f1 PF: > { %s15_s18 = sadd.s32 1, %s1082_s18  }
 0x1f2   : > { %p12_p4 = scmp.ge.s32.totalorder %s15_s18, 4  }
 0x1f4   :  { %14 = sbr.rel (!%p12_p4) target bundleno = 1 (0x1), region = 70 }

</bundles_post_ra>
